<compile_context>
chip_gen: v7x
topology: tpu7x:2x2x1
jax: 0.10.0
libtpu: 0.0.40
codegen_flags: <defaults>
</compile_context>

<pallas_src>
import jax
import jax.numpy as jnp
from jax.experimental import pallas as pl
from jax.experimental.pallas import tpu as pltpu


def _sub_kernel(x_ref, y_ref, o_ref):
    # Elementwise VPU subtract on the current (TM, TN) tile; BlockSpec
    # pipelining overlaps the HBM DMA of tile i+1 with compute of tile i.
    o_ref[...] = x_ref[...] - y_ref[...]


def _sub_2d(x2, y2, tm, tn):
    M, N = x2.shape
    grid = (pl.cdiv(M, tm), pl.cdiv(N, tn))
    return pl.pallas_call(
        _sub_kernel,
        out_shape=jax.ShapeDtypeStruct((M, N), x2.dtype),
        grid=grid,
        in_specs=[
            pl.BlockSpec((tm, tn), lambda i, j: (i, j)),
            pl.BlockSpec((tm, tn), lambda i, j: (i, j)),
        ],
        out_specs=pl.BlockSpec((tm, tn), lambda i, j: (i, j)),
        compiler_params=pltpu.CompilerParams(
            dimension_semantics=("parallel", "parallel"),
        ),
    )(x2, y2)


@jax.jit
def sub(x, y):
    assert x.shape == y.shape, "elementwise subtraction expects matching shapes"
    orig_shape = x.shape

    # Collapse to a 2D (M, N) row-major view (free reshape) so the lane axis
    # stays the contiguous minor dimension.
    if x.ndim == 0:
        x2, y2 = x.reshape(1, 1), y.reshape(1, 1)
    elif x.ndim == 1:
        x2, y2 = x.reshape(1, x.shape[0]), y.reshape(1, y.shape[0])
    else:
        N = x.shape[-1]
        M = 1
        for d in x.shape[:-1]:
            M *= d
        x2, y2 = x.reshape(M, N), y.reshape(M, N)

    M, N = x2.shape
    # Tile sizes: full-dim blocks when small (valid per the (8,128) rule),
    # otherwise lane-dense (8,128)-aligned tiles for pipelined HBM streaming.
    tm = M if M <= 256 else 256
    tn = N if N <= 1024 else 1024

    out2 = _sub_2d(x2, y2, tm, tn)
    return out2.reshape(orig_shape)


if __name__ == "__main__":
    key = jax.random.PRNGKey(0)
    kx, ky = jax.random.split(key)
    x = jax.random.normal(kx, (4, 4), dtype=jnp.float32)
    y = jax.random.normal(ky, (4, 4), dtype=jnp.float32)

    out = sub(x, y)
    jax.block_until_ready(out)

    ref = x - y
    assert out.shape == ref.shape
    assert jnp.allclose(out, ref), "mismatch vs reference x - y"

    print("KERNEL_OK")
</pallas_src>

<mosaic_0001>
module attributes {stable_mosaic.version = 11 : i64} {
  func.func @_sub_kernel(%arg0: i32, %arg1: i32, %arg2: memref<4x4xf32, #tpu.memory_space<vmem>>, %arg3: memref<4x4xf32, #tpu.memory_space<vmem>>, %arg4: memref<4x4xf32, #tpu.memory_space<vmem>>) attributes {dimension_semantics = [#tpu.dimension_semantics<parallel>, #tpu.dimension_semantics<parallel>], iteration_bounds = array<i64: 1, 1>, scalar_prefetch = 0 : i64, scratch_operands = 0 : i64, tpu.core_type = #tpu.core_type<tc>, window_params = [{transform_indices = @transform_0, window_bounds = array<i64: 4, 4>}, {transform_indices = @transform_1, window_bounds = array<i64: 4, 4>}, {transform_indices = @transform_2, window_bounds = array<i64: 4, 4>}]} {
    %c0 = arith.constant 0 : index
    %c0_0 = arith.constant 0 : index
    %0 = vector.load %arg2[%c0, %c0_0] : memref<4x4xf32, #tpu.memory_space<vmem>>, vector<4x4xf32>
    %c0_1 = arith.constant 0 : index
    %c0_2 = arith.constant 0 : index
    %1 = vector.load %arg3[%c0_1, %c0_2] : memref<4x4xf32, #tpu.memory_space<vmem>>, vector<4x4xf32>
    %2 = arith.subf %0, %1 : vector<4x4xf32>
    %c0_3 = arith.constant 0 : index
    %c0_4 = arith.constant 0 : index
    %3 = vector.load %arg4[%c0_3, %c0_4] : memref<4x4xf32, #tpu.memory_space<vmem>>, vector<4x4xf32>
    tpu.vector_store %arg4[%c0_3, %c0_4], %2 {strides = array<i32>} : memref<4x4xf32, #tpu.memory_space<vmem>>, vector<4x4xf32>,
    return
  }
  func.func @transform_0(%arg0: i32, %arg1: i32) -> (i32, i32) {
    %c0_i32 = arith.constant 0 : i32
    return %arg0, %arg1 : i32, i32
  }
  func.func @transform_1(%arg0: i32, %arg1: i32) -> (i32, i32) {
    %c0_i32 = arith.constant 0 : i32
    return %arg0, %arg1 : i32, i32
  }
  func.func @transform_2(%arg0: i32, %arg1: i32) -> (i32, i32) {
    %c0_i32 = arith.constant 0 : i32
    return %arg0, %arg1 : i32, i32
  }
}

</mosaic_0001>

<bundles_post_ra>
// kernel: sub.1
= control target key start
LH: loop header
LB: loop body
LE: loop exit
PB: predicated region body
PF: predicated region fallthrough
CT: control target
= control target key end

     0   :  { %7 = vsyncpa [#allocation3], 0  ;;  %s186_s0 = inlined_call_operand.hbm [shape: f32[4,4], index: 0, kind: input, shape index: {}]   ;;  %s187_s1 = inlined_call_operand.hbm [shape: f32[4,4], index: 1, kind: input, shape index: {}]   ;;  %s188_s2 = inlined_call_operand.hbm [shape: f32[4,4], index: 2, kind: output, shape index: {}]  }
   0x1   :  { %8 = vsyncpa [#allocation6], 0 }
   0x2   :  { %9 = vsyncpa [#allocation4], 0  ;;  %s132_s9 = smov [#allocation2]   ;;  %s133_s11 = smov [#allocation5]  }
   0x3   :  { %s16_s10 = sshll.u32 %s132_s9, 4  ;;  %s26_s12 = sshll.u32 %s133_s11, 4  ;;  %s17_s10 = int_to_ptr.vmem [resolvable:$true] %s16_s10  ;;  %s27_s12 = int_to_ptr.vmem [resolvable:$true] %s26_s12 }
   0x4   :  { %s60_s15 = scalar_lea.hbm %s186_s0, 64 }
   0x5   :  { %p61_p0 = scmp.ne.s32.totalorder %s186_s0, %s60_s15  ;;  %p64_p1 = scmp.lt.u32.totalorder %s60_s15, %s186_s0 }
   0x7   :  { %p66_p2 = pnand %p64_p1, %p61_p0 }
   0x9   :  { %69 = shalt.err (!%p66_p2)
}
   0xa   :  { %s70_s20 = scalar_lea.vmem %s17_s10, 64  ;;  %p75_p4 = scmp.lt.s32.totalorder %s17_s10, %s17_s10 }
   0xb   :  { %p71_p3 = scmp.ne.s32.totalorder %s17_s10, %s70_s20  ;;  %p76_p5 = scmp.lt.s32.totalorder %s70_s20, %s70_s20 }
   0xd   :  { %p77_p6 = por %p76_p5, %p75_p4 }
   0xf   :  { %p78_p7 = pnand %p77_p6, %p71_p3 }
  0x11   :  { %81 = shalt.err (!%p78_p7)
}
  0x12   :  { %19 = dma.hbm_to_vmem [thread:$0]  %s186_s0, 64, %s17_s10, [#allocation3]  }
  0x13   :  { %s82_s25 = scalar_lea.hbm %s187_s1, 64 }
  0x14   :  { %p83_p8 = scmp.ne.s32.totalorder %s187_s1, %s82_s25  ;;  %p86_p9 = scmp.lt.u32.totalorder %s82_s25, %s187_s1 }
  0x16   :  { %p88_p10 = pnand %p86_p9, %p83_p8 }
  0x18   :  { %91 = shalt.err (!%p88_p10)
}
  0x19   :  { %s92_s30 = scalar_lea.vmem %s27_s12, 64  ;;  %p97_p12 = scmp.lt.s32.totalorder %s27_s12, %s27_s12 }
  0x1a   :  { %p93_p11 = scmp.ne.s32.totalorder %s27_s12, %s92_s30  ;;  %p98_p13 = scmp.lt.s32.totalorder %s92_s30, %s92_s30 }
  0x1c   :  { %p99_p0 = por %p98_p13, %p97_p12 }
  0x1e   :  { %p100_p1 = pnand %p99_p0, %p93_p11 }
  0x20   :  { %103 = shalt.err (!%p100_p1)
}
  0x21   :  { %29 = dma.hbm_to_vmem [thread:$0]  %s187_s1, 64, %s27_s12, [#allocation6]  }
  0x22   :  { %126 = dma.done.wait [#allocation3], 64  }
  0x23   :  { %127 = vsyncadd [#allocation3], 4294967232 }
  0x24   :  { %128 = dma.done.wait [#allocation6], 64  }
  0x25   :  { %129 = vsyncadd [#allocation6], 4294967232  ;;  %s134_s4 = smov [#allocation7]   ;;  %v36_v0 = vld [vmem:[#allocation2] sm:$0xf]  ;;  %vm39_vm0 = vcmask 27648  }
  0x26   :  { %s47_s5 = sshll.u32 %s134_s4, 4  ;;  %v37_v1 = vld [vmem:[#allocation5] sm:$0xf]  ;;  %s48_s5 = int_to_ptr.vmem [resolvable:$true] %s47_s5 }
  0x27   :  { %v38_v2 = vsub.f32 %v36_v0, %v37_v1  ;;  %s104_s6 = scalar_lea.vmem %s48_s5, 64  ;;  %p109_p3 = scmp.lt.s32.totalorder %s48_s5, %s48_s5 }
  0x28   :  { %p105_p2 = scmp.ne.s32.totalorder %s48_s5, %s104_s6  ;;  %p110_p4 = scmp.lt.s32.totalorder %s104_s6, %s104_s6 }
  0x29   :  { %40 = vst.msk [vmem:[#allocation7] sm:$0xf] %vm39_vm0, %v38_v2 }
  0x2a   :  { %p111_p5 = por %p110_p4, %p109_p3 }
  0x2c   :  { %p112_p6 = pnand %p111_p5, %p105_p2 }
  0x2e   :  { %115 = shalt.err (!%p112_p6)
}
  0x2f   :  { %s116_s8 = scalar_lea.hbm %s188_s2, 64 }
  0x30   :  { %p117_p7 = scmp.ne.s32.totalorder %s188_s2, %s116_s8  ;;  %p120_p8 = scmp.lt.u32.totalorder %s116_s8, %s188_s2 }
  0x32   :  { %p122_p9 = pnand %p120_p8, %p117_p7 }
  0x34   :  { %125 = shalt.err (!%p122_p9)
}
  0x35   :  { %50 = dma.vmem_to_hbm [thread:$0]  %s48_s5, 64, %s188_s2, [#allocation4]  }
  0x36   :  { %130 = dma.done.wait [#allocation4], 64  }
  0x37   :  { %131 = vsyncadd [#allocation4], 4294967232 }
  0x38   :  { %54 = vsyncpa [#allocation3], 1 }
  0x39   :  { %55 = vsyncpa [#allocation6], 1 }
  0x3a   :  { %56 = vsyncpa [#allocation4], 1 }

</bundles_post_ra>
